<compile_context>
chip_gen: v6e
topology: v6e:2x2x1
jax: 0.10.0
libtpu: 0.0.40
codegen_flags: <defaults>
</compile_context>

<pallas_src>
import functools

import jax
import jax.numpy as jnp
import numpy as np
from jax.experimental import pallas as pl
from jax.experimental.pallas import tpu as pltpu

LN_EPS = 1e-6  # custom LayerNorm eps (added to std, not var)


def _layernorm(z, gamma, beta):
    """ERL-style LayerNorm: gamma * (z - mean) / (std_unbiased + eps) + beta."""
    n = z.shape[-1]
    mu = jnp.mean(z, axis=-1, keepdims=True)
    d = z - mu
    var_unbiased = jnp.sum(d * d, axis=-1, keepdims=True) / (n - 1)
    std = jnp.sqrt(var_unbiased)
    # One reciprocal per row, then a broadcast multiply (instead of a per-element
    # divide). approx=False keeps exact math within the 1e-5 test tolerance.
    inv = pl.reciprocal(std + LN_EPS, approx=False)
    return gamma * (d * inv) + beta


def _actor_kernel(x_ref, w_in_ref, w_stack_ref, vecs_ref, out_ref, *, num_hidden):
    """Whole Actor forward in one kernel invocation (everything fits in VMEM).

    w_stack_ref: (L+1, h, h) — hidden Linear weights, then the output-head
                 weight zero-padded to (h, h) as the last slice.
    vecs_ref rows: [b_in, g_in, beta_in,
                    b_hid0, g_hid0, beta_hid0, ..., b_out (zero-padded to h)]
    """
    x = x_ref[...]  # (B, state_dim) f32

    # Input block: Linear(state_dim, h) + LayerNorm + tanh
    z = jnp.dot(x, w_in_ref[...], preferred_element_type=jnp.float32) + vecs_ref[0]
    a = jnp.tanh(_layernorm(z, vecs_ref[1], vecs_ref[2]))

    # Hidden blocks (static unroll; num_hidden is a compile-time constant)
    for l in range(num_hidden):
        r = 3 * (l + 1)
        z = jnp.dot(a, w_stack_ref[l], preferred_element_type=jnp.float32) + vecs_ref[r]
        a = jnp.tanh(_layernorm(z, vecs_ref[r + 1], vecs_ref[r + 2]))

    # Output head: Linear(h, action_dim) + Tanh. The head weight/bias are
    # zero-padded to width h; compute full width on the MXU (same single pass),
    # then statically slice the first A lanes before the tanh/store.
    A = out_ref.shape[1]
    z_out = (jnp.dot(a, w_stack_ref[num_hidden], preferred_element_type=jnp.float32)
             + vecs_ref[3 * (num_hidden + 1)])
    out_ref[...] = jnp.tanh(z_out[:, :A])


@functools.partial(jax.jit, static_argnames=("action_dim",))
def actor_forward(state, w_in, w_stack, vecs, *, action_dim):
    """state: (B, state_dim). Returns (B, action_dim) actions in [-1, 1]."""
    state = state.astype(jnp.float32)
    B, S = state.shape
    h = w_in.shape[1]
    L = w_stack.shape[0] - 1    # static under jit
    A = int(action_dim)

    # Advisory cost hint: matmul flops + transcendentals + total bytes.
    flops = 2 * B * (S * h + L * h * h + h * h)
    transcendentals = B * ((L + 1) * h + A + 2 * (L + 1))   # tanh + sqrt/recip
    bytes_accessed = 4 * (B * S + S * h + (L + 1) * h * h
                          + (3 * (L + 1) + 1) * h + B * A)

    vmem = pl.BlockSpec(memory_space=pltpu.MemorySpace.VMEM)
    kernel = functools.partial(_actor_kernel, num_hidden=int(L))
    return pl.pallas_call(
        kernel,
        out_shape=jax.ShapeDtypeStruct((B, A), jnp.float32),
        in_specs=[vmem] * 4,
        out_specs=vmem,
        cost_estimate=pl.CostEstimate(
            flops=flops,
            transcendentals=transcendentals,
            bytes_accessed=bytes_accessed,
        ),
    )(state, w_in, w_stack, vecs)


def init_params(key, state_dim, action_dim, hidden, num_layers):
    """PyTorch-default-style init (uniform +-1/sqrt(fan_in)); weights stored (in, out).

    LayerNorm gamma/beta are randomized slightly so the test exercises them.
    Requires num_layers >= 1 and action_dim <= hidden (true for typical ES/RL configs).
    """
    assert action_dim <= hidden, "head folding assumes action_dim <= hidden"
    keys = jax.random.split(key, 4 * (num_layers + 2))

    def linear(kw, kb, fan_in, fan_out):
        bound = 1.0 / np.sqrt(fan_in)
        w = jax.random.uniform(kw, (fan_in, fan_out), jnp.float32, -bound, bound)
        b = jax.random.uniform(kb, (fan_out,), jnp.float32, -bound, bound)
        return w, b

    def ln_params(kg, kb, n):
        g = 1.0 + 0.1 * jax.random.normal(kg, (n,), jnp.float32)
        b = 0.1 * jax.random.normal(kb, (n,), jnp.float32)
        return g, b

    w_in, b_in = linear(keys[0], keys[1], state_dim, hidden)
    g_in, beta_in = ln_params(keys[2], keys[3], hidden)

    w_hid, b_hid, g_hid, beta_hid = [], [], [], []
    for l in range(num_layers):
        k0 = 4 + 4 * l
        w, b = linear(keys[k0], keys[k0 + 1], hidden, hidden)
        g, bt = ln_params(keys[k0 + 2], keys[k0 + 3], hidden)
        w_hid.append(w); b_hid.append(b); g_hid.append(g); beta_hid.append(bt)

    k0 = 4 + 4 * num_layers
    w_out, b_out = linear(keys[k0], keys[k0 + 1], hidden, action_dim)

    raw = dict(
        w_in=w_in, b_in=b_in, g_in=g_in, beta_in=beta_in,
        w_hid=w_hid, b_hid=b_hid, g_hid=g_hid, beta_hid=beta_hid,
        w_out=w_out, b_out=b_out,
    )

    # Pack once (not per forward call):
    #   * hidden weights + zero-padded head weight -> one (L+1, h, h) slab
    #   * all per-layer vectors + zero-padded head bias -> one (3*(L+1)+1, h) slab
    w_out_padded = jnp.zeros((hidden, hidden), jnp.float32).at[:, :action_dim].set(w_out)
    w_stack = jnp.concatenate([jnp.stack(w_hid, axis=0), w_out_padded[None]], axis=0)

    rows = [b_in, g_in, beta_in]
    for l in range(num_layers):
        rows += [b_hid[l], g_hid[l], beta_hid[l]]
    rows.append(jnp.zeros((hidden,), jnp.float32).at[:action_dim].set(b_out))

    packed = dict(
        w_in=w_in,                       # (S, h)
        w_stack=w_stack,                 # (L+1, h, h)
        vecs=jnp.stack(rows, axis=0),    # (3*(L+1)+1, h)
    )
    return raw, packed


def reference_forward(state, raw, num_layers):
    """Pure-JAX reference of the same math (for correctness check)."""
    def ln(z, g, b):
        n = z.shape[-1]
        mu = jnp.mean(z, axis=-1, keepdims=True)
        d = z - mu
        var = jnp.sum(d * d, axis=-1, keepdims=True) / (n - 1)
        std = jnp.sqrt(var)
        return g * d / (std + LN_EPS) + b

    x = state.astype(jnp.float32)
    a = jnp.tanh(ln(x @ raw["w_in"] + raw["b_in"], raw["g_in"], raw["beta_in"]))
    for l in range(num_layers):
        a = jnp.tanh(ln(a @ raw["w_hid"][l] + raw["b_hid"][l],
                        raw["g_hid"][l], raw["beta_hid"][l]))
    return jnp.tanh(a @ raw["w_out"] + raw["b_out"])


if __name__ == "__main__":
    # Small synthetic problem: state_dim=24, action_dim=8, hidden=32, 2 hidden blocks.
    B, STATE_DIM, ACTION_DIM, HIDDEN, NUM_LAYERS = 8, 24, 8, 32, 2

    key = jax.random.PRNGKey(0)
    k_s, k_p = jax.random.split(key, 2)
    state = jax.random.normal(k_s, (B, STATE_DIM), jnp.float32)
    raw, packed = init_params(k_p, STATE_DIM, ACTION_DIM, HIDDEN, NUM_LAYERS)

    out = actor_forward(state, packed["w_in"], packed["w_stack"], packed["vecs"],
                        action_dim=ACTION_DIM)
    jax.block_until_ready(out)

    ref = reference_forward(state, raw, NUM_LAYERS)
    np.testing.assert_allclose(np.asarray(out), np.asarray(ref), rtol=1e-5, atol=1e-5)
    assert out.shape == (B, ACTION_DIM)
    assert bool(jnp.all(jnp.abs(out) <= 1.0))  # tanh head bounds actions

    print("KERNEL_OK")
</pallas_src>

<mosaic_0001>
module attributes {stable_mosaic.version = 11 : i64} {
  func.func @_actor_kernel(%arg0: memref<8x24xf32, #tpu.memory_space<vmem>>, %arg1: memref<24x32xf32, #tpu.memory_space<vmem>>, %arg2: memref<3x32x32xf32, #tpu.memory_space<vmem>>, %arg3: memref<10x32xf32, #tpu.memory_space<vmem>>, %arg4: memref<8x8xf32, #tpu.memory_space<vmem>>) attributes {dimension_semantics = [], scalar_prefetch = 0 : i64, scratch_operands = 0 : i64, tpu.core_type = #tpu.core_type<tc>} {
    %c0 = arith.constant 0 : index
    %c0_0 = arith.constant 0 : index
    %0 = vector.load %arg0[%c0, %c0_0] : memref<8x24xf32, #tpu.memory_space<vmem>>, vector<8x24xf32>
    %c0_1 = arith.constant 0 : index
    %c0_2 = arith.constant 0 : index
    %1 = vector.load %arg1[%c0_1, %c0_2] : memref<24x32xf32, #tpu.memory_space<vmem>>, vector<24x32xf32>
    %cst = arith.constant dense<0.000000e+00> : vector<8x32xf32>
    %2 = tpu.matmul %0, %1, %cst {dimension_numbers = #tpu.dot_dimension_numbers<[1], [0], [0], [1], [0, 0, 1, 1], [], []>} : vector<8x24xf32>, vector<24x32xf32>, vector<8x32xf32> -> vector<8x32xf32>
    %c0_3 = arith.constant 0 : index
    %c0_4 = arith.constant 0 : index
    %3 = vector.load %arg3[%c0_3, %c0_4] : memref<10x32xf32, #tpu.memory_space<vmem>>, vector<1x32xf32>
    %4 = vector.shape_cast %3 : vector<1x32xf32> to vector<32xf32>
    %5 = vector.shape_cast %4 : vector<32xf32> to vector<1x32xf32>
    %6 = vector.broadcast %5 : vector<1x32xf32> to vector<8x32xf32>
    %7 = arith.addf %2, %6 : vector<8x32xf32>
    %c1 = arith.constant 1 : index
    %c0_5 = arith.constant 0 : index
    %8 = vector.load %arg3[%c1, %c0_5] : memref<10x32xf32, #tpu.memory_space<vmem>>, vector<1x32xf32>
    %9 = vector.shape_cast %8 : vector<1x32xf32> to vector<32xf32>
    %c2 = arith.constant 2 : index
    %c0_6 = arith.constant 0 : index
    %10 = vector.load %arg3[%c2, %c0_6] : memref<10x32xf32, #tpu.memory_space<vmem>>, vector<1x32xf32>
    %11 = vector.shape_cast %10 : vector<1x32xf32> to vector<32xf32>
    %cst_7 = arith.constant dense<0.000000e+00> : vector<8xf32>
    %12 = vector.multi_reduction <add>, %7, %cst_7 [1] : vector<8x32xf32> to vector<8xf32>
    %13 = vector.shape_cast %12 : vector<8xf32> to vector<8x1xf32>
    %cst_8 = arith.constant 3.200000e+01 : f32
    %14 = vector.broadcast %cst_8 : f32 to vector<8x1xf32>
    %15 = arith.divf %13, %14 : vector<8x1xf32>
    %16 = vector.broadcast %15 : vector<8x1xf32> to vector<8x32xf32>
    %17 = arith.subf %7, %16 : vector<8x32xf32>
    %18 = arith.mulf %17, %17 : vector<8x32xf32>
    %cst_9 = arith.constant dense<0.000000e+00> : vector<8xf32>
    %19 = vector.multi_reduction <add>, %18, %cst_9 [1] : vector<8x32xf32> to vector<8xf32>
    %20 = vector.shape_cast %19 : vector<8xf32> to vector<8x1xf32>
    %cst_10 = arith.constant 3.100000e+01 : f32
    %21 = vector.broadcast %cst_10 : f32 to vector<8x1xf32>
    %22 = arith.divf %20, %21 : vector<8x1xf32>
    %23 = math.sqrt %22 : vector<8x1xf32>
    %cst_11 = arith.constant 9.99999997E-7 : f32
    %24 = vector.broadcast %cst_11 : f32 to vector<8x1xf32>
    %25 = arith.addf %23, %24 : vector<8x1xf32>
    %26 = tpu.reciprocal %25 : vector<8x1xf32> -> vector<8x1xf32>
    %27 = vector.broadcast %26 : vector<8x1xf32> to vector<8x32xf32>
    %28 = arith.mulf %17, %27 : vector<8x32xf32>
    %29 = vector.shape_cast %9 : vector<32xf32> to vector<1x32xf32>
    %30 = vector.broadcast %29 : vector<1x32xf32> to vector<8x32xf32>
    %31 = arith.mulf %30, %28 : vector<8x32xf32>
    %32 = vector.shape_cast %11 : vector<32xf32> to vector<1x32xf32>
    %33 = vector.broadcast %32 : vector<1x32xf32> to vector<8x32xf32>
    %34 = arith.addf %31, %33 : vector<8x32xf32>
    %35 = math.tanh %34 : vector<8x32xf32>
    %c0_12 = arith.constant 0 : index
    %c0_13 = arith.constant 0 : index
    %c0_14 = arith.constant 0 : index
    %36 = vector.load %arg2[%c0_12, %c0_13, %c0_14] : memref<3x32x32xf32, #tpu.memory_space<vmem>>, vector<1x32x32xf32>
    %37 = vector.shape_cast %36 : vector<1x32x32xf32> to vector<32x32xf32>
    %cst_15 = arith.constant dense<0.000000e+00> : vector<8x32xf32>
    %38 = tpu.matmul %35, %37, %cst_15 {dimension_numbers = #tpu.dot_dimension_numbers<[1], [0], [0], [1], [0, 0, 1, 1], [], []>} : vector<8x32xf32>, vector<32x32xf32>, vector<8x32xf32> -> vector<8x32xf32>
    %c3 = arith.constant 3 : index
    %c0_16 = arith.constant 0 : index
    %39 = vector.load %arg3[%c3, %c0_16] : memref<10x32xf32, #tpu.memory_space<vmem>>, vector<1x32xf32>
    %40 = vector.shape_cast %39 : vector<1x32xf32> to vector<32xf32>
    %41 = vector.shape_cast %40 : vector<32xf32> to vector<1x32xf32>
    %42 = vector.broadcast %41 : vector<1x32xf32> to vector<8x32xf32>
    %43 = arith.addf %38, %42 : vector<8x32xf32>
    %c4 = arith.constant 4 : index
    %c0_17 = arith.constant 0 : index
    %44 = vector.load %arg3[%c4, %c0_17] : memref<10x32xf32, #tpu.memory_space<vmem>>, vector<1x32xf32>
    %45 = vector.shape_cast %44 : vector<1x32xf32> to vector<32xf32>
    %c5 = arith.constant 5 : index
    %c0_18 = arith.constant 0 : index
    %46 = vector.load %arg3[%c5, %c0_18] : memref<10x32xf32, #tpu.memory_space<vmem>>, vector<1x32xf32>
    %47 = vector.shape_cast %46 : vector<1x32xf32> to vector<32xf32>
    %cst_19 = arith.constant dense<0.000000e+00> : vector<8xf32>
    %48 = vector.multi_reduction <add>, %43, %cst_19 [1] : vector<8x32xf32> to vector<8xf32>
    %49 = vector.shape_cast %48 : vector<8xf32> to vector<8x1xf32>
    %cst_20 = arith.constant 3.200000e+01 : f32
    %50 = vector.broadcast %cst_20 : f32 to vector<8x1xf32>
    %51 = arith.divf %49, %50 : vector<8x1xf32>
    %52 = vector.broadcast %51 : vector<8x1xf32> to vector<8x32xf32>
    %53 = arith.subf %43, %52 : vector<8x32xf32>
    %54 = arith.mulf %53, %53 : vector<8x32xf32>
    %cst_21 = arith.constant dense<0.000000e+00> : vector<8xf32>
    %55 = vector.multi_reduction <add>, %54, %cst_21 [1] : vector<8x32xf32> to vector<8xf32>
    %56 = vector.shape_cast %55 : vector<8xf32> to vector<8x1xf32>
    %cst_22 = arith.constant 3.100000e+01 : f32
    %57 = vector.broadcast %cst_22 : f32 to vector<8x1xf32>
    %58 = arith.divf %56, %57 : vector<8x1xf32>
    %59 = math.sqrt %58 : vector<8x1xf32>
    %cst_23 = arith.constant 9.99999997E-7 : f32
    %60 = vector.broadcast %cst_23 : f32 to vector<8x1xf32>
    %61 = arith.addf %59, %60 : vector<8x1xf32>
    %62 = tpu.reciprocal %61 : vector<8x1xf32> -> vector<8x1xf32>
    %63 = vector.broadcast %62 : vector<8x1xf32> to vector<8x32xf32>
    %64 = arith.mulf %53, %63 : vector<8x32xf32>
    %65 = vector.shape_cast %45 : vector<32xf32> to vector<1x32xf32>
    %66 = vector.broadcast %65 : vector<1x32xf32> to vector<8x32xf32>
    %67 = arith.mulf %66, %64 : vector<8x32xf32>
    %68 = vector.shape_cast %47 : vector<32xf32> to vector<1x32xf32>
    %69 = vector.broadcast %68 : vector<1x32xf32> to vector<8x32xf32>
    %70 = arith.addf %67, %69 : vector<8x32xf32>
    %71 = math.tanh %70 : vector<8x32xf32>
    %c1_24 = arith.constant 1 : index
    %c0_25 = arith.constant 0 : index
    %c0_26 = arith.constant 0 : index
    %72 = vector.load %arg2[%c1_24, %c0_25, %c0_26] : memref<3x32x32xf32, #tpu.memory_space<vmem>>, vector<1x32x32xf32>
    %73 = vector.shape_cast %72 : vector<1x32x32xf32> to vector<32x32xf32>
    %cst_27 = arith.constant dense<0.000000e+00> : vector<8x32xf32>
    %74 = tpu.matmul %71, %73, %cst_27 {dimension_numbers = #tpu.dot_dimension_numbers<[1], [0], [0], [1], [0, 0, 1, 1], [], []>} : vector<8x32xf32>, vector<32x32xf32>, vector<8x32xf32> -> vector<8x32xf32>
    %c6 = arith.constant 6 : index
    %c0_28 = arith.constant 0 : index
    %75 = vector.load %arg3[%c6, %c0_28] : memref<10x32xf32, #tpu.memory_space<vmem>>, vector<1x32xf32>
    %76 = vector.shape_cast %75 : vector<1x32xf32> to vector<32xf32>
    %77 = vector.shape_cast %76 : vector<32xf32> to vector<1x32xf32>
    %78 = vector.broadcast %77 : vector<1x32xf32> to vector<8x32xf32>
    %79 = arith.addf %74, %78 : vector<8x32xf32>
    %c7 = arith.constant 7 : index
    %c0_29 = arith.constant 0 : index
    %80 = vector.load %arg3[%c7, %c0_29] : memref<10x32xf32, #tpu.memory_space<vmem>>, vector<1x32xf32>
    %81 = vector.shape_cast %80 : vector<1x32xf32> to vector<32xf32>
    %c8 = arith.constant 8 : index
    %c0_30 = arith.constant 0 : index
    %82 = vector.load %arg3[%c8, %c0_30] : memref<10x32xf32, #tpu.memory_space<vmem>>, vector<1x32xf32>
    %83 = vector.shape_cast %82 : vector<1x32xf32> to vector<32xf32>
    %cst_31 = arith.constant dense<0.000000e+00> : vector<8xf32>
    %84 = vector.multi_reduction <add>, %79, %cst_31 [1] : vector<8x32xf32> to vector<8xf32>
    %85 = vector.shape_cast %84 : vector<8xf32> to vector<8x1xf32>
    %cst_32 = arith.constant 3.200000e+01 : f32
    %86 = vector.broadcast %cst_32 : f32 to vector<8x1xf32>
    %87 = arith.divf %85, %86 : vector<8x1xf32>
    %88 = vector.broadcast %87 : vector<8x1xf32> to vector<8x32xf32>
    %89 = arith.subf %79, %88 : vector<8x32xf32>
    %90 = arith.mulf %89, %89 : vector<8x32xf32>
    %cst_33 = arith.constant dense<0.000000e+00> : vector<8xf32>
    %91 = vector.multi_reduction <add>, %90, %cst_33 [1] : vector<8x32xf32> to vector<8xf32>
    %92 = vector.shape_cast %91 : vector<8xf32> to vector<8x1xf32>
    %cst_34 = arith.constant 3.100000e+01 : f32
    %93 = vector.broadcast %cst_34 : f32 to vector<8x1xf32>
    %94 = arith.divf %92, %93 : vector<8x1xf32>
    %95 = math.sqrt %94 : vector<8x1xf32>
    %cst_35 = arith.constant 9.99999997E-7 : f32
    %96 = vector.broadcast %cst_35 : f32 to vector<8x1xf32>
    %97 = arith.addf %95, %96 : vector<8x1xf32>
    %98 = tpu.reciprocal %97 : vector<8x1xf32> -> vector<8x1xf32>
    %99 = vector.broadcast %98 : vector<8x1xf32> to vector<8x32xf32>
    %100 = arith.mulf %89, %99 : vector<8x32xf32>
    %101 = vector.shape_cast %81 : vector<32xf32> to vector<1x32xf32>
    %102 = vector.broadcast %101 : vector<1x32xf32> to vector<8x32xf32>
    %103 = arith.mulf %102, %100 : vector<8x32xf32>
    %104 = vector.shape_cast %83 : vector<32xf32> to vector<1x32xf32>
    %105 = vector.broadcast %104 : vector<1x32xf32> to vector<8x32xf32>
    %106 = arith.addf %103, %105 : vector<8x32xf32>
    %107 = math.tanh %106 : vector<8x32xf32>
    %c2_36 = arith.constant 2 : index
    %c0_37 = arith.constant 0 : index
    %c0_38 = arith.constant 0 : index
    %108 = vector.load %arg2[%c2_36, %c0_37, %c0_38] : memref<3x32x32xf32, #tpu.memory_space<vmem>>, vector<1x32x32xf32>
    %109 = vector.shape_cast %108 : vector<1x32x32xf32> to vector<32x32xf32>
    %cst_39 = arith.constant dense<0.000000e+00> : vector<8x32xf32>
    %110 = tpu.matmul %107, %109, %cst_39 {dimension_numbers = #tpu.dot_dimension_numbers<[1], [0], [0], [1], [0, 0, 1, 1], [], []>} : vector<8x32xf32>, vector<32x32xf32>, vector<8x32xf32> -> vector<8x32xf32>
    %c9 = arith.constant 9 : index
    %c0_40 = arith.constant 0 : index
    %111 = vector.load %arg3[%c9, %c0_40] : memref<10x32xf32, #tpu.memory_space<vmem>>, vector<1x32xf32>
    %112 = vector.shape_cast %111 : vector<1x32xf32> to vector<32xf32>
    %113 = vector.shape_cast %112 : vector<32xf32> to vector<1x32xf32>
    %114 = vector.broadcast %113 : vector<1x32xf32> to vector<8x32xf32>
    %115 = arith.addf %110, %114 : vector<8x32xf32>
    %116 = vector.extract_strided_slice %115 {offsets = [0, 0], sizes = [8, 8], strides = [1, 1]} : vector<8x32xf32> to vector<8x8xf32>
    %117 = math.tanh %116 : vector<8x8xf32>
    %c0_41 = arith.constant 0 : index
    %c0_42 = arith.constant 0 : index
    %118 = vector.load %arg4[%c0_41, %c0_42] : memref<8x8xf32, #tpu.memory_space<vmem>>, vector<8x8xf32>
    tpu.vector_store %arg4[%c0_41, %c0_42], %117 {strides = array<i32>} : memref<8x8xf32, #tpu.memory_space<vmem>>, vector<8x8xf32>,
    return
  }
}

</mosaic_0001>

<bundles_post_ra>
// kernel: actor_forward.1
= control target key start
LH: loop header
LB: loop body
LE: loop exit
PB: predicated region body
PF: predicated region fallthrough
CT: control target
= control target key end

     0   :  { %9 = vsyncpa [#allocation3], 0  ;;  %s826_s0 = inlined_call_operand.hbm [shape: f32[8,24], index: 0, kind: input, shape index: {}]   ;;  %s827_s1 = inlined_call_operand.hbm [shape: f32[24,32], index: 1, kind: input, shape index: {}]   ;;  %s828_s2 = inlined_call_operand.hbm [shape: f32[3,32,32], index: 2, kind: input, shape index: {}]   ;;  %s829_s3 = inlined_call_operand.hbm [shape: f32[10,32], index: 3, kind: input, shape index: {}]   ;;  %s830_s4 = inlined_call_operand.hbm [shape: f32[8,8], index: 4, kind: output, shape index: {}]  }
   0x1   :  { %10 = vsyncpa [#allocation6], 0 }
   0x2   :  { %11 = vsyncpa [#allocation9], 0 }
   0x3   :  { %12 = vsyncpa [#allocation4], 0  ;;  %s736_s15 = smov [#allocation5]  }
   0x4   :  { %s28_s16 = sshll.u32 %s736_s15, 4  ;;  %s29_s16 = int_to_ptr.vmem [resolvable:$true] %s28_s16 }
   0x5   :  { %s636_s17 = scalar_lea.vmem %s29_s16, 384  ;;  %p641_p1 = scmp.lt.s32.totalorder %s29_s16, %s29_s16 }
   0x6   :  { %p637_p0 = scmp.ne.s32.totalorder %s29_s16, %s636_s17  ;;  %p642_p2 = scmp.lt.s32.totalorder %s636_s17, %s636_s17 }
   0x8   :  { %p643_p3 = por %p642_p2, %p641_p1 }
   0xa   :  { %p644_p4 = pnand %p643_p3, %p637_p0 }
   0xc   :  { %647 = shalt.err (!%p644_p4)
}
   0xd   :  { %s737_s18 = smov 128   ;;  %s738_s19 = smov 8  }
   0xe   :  { %34 = dma.hbm_to_vmem [thread:$0]  %s827_s1, 384, %s29_s16, [#allocation6], %s737_s18, %s737_s18, %s738_s19  }
   0xf   :  { %s739_s22 = smov [#allocation2]   ;;  %s740_s24 = smov [#allocation7]  }
  0x10   :  { %s19_s23 = sshll.u32 %s739_s22, 4  ;;  %s40_s25 = sshll.u32 %s740_s24, 4  ;;  %s20_s23 = int_to_ptr.vmem [resolvable:$true] %s19_s23  ;;  %s41_s25 = int_to_ptr.vmem [resolvable:$true] %s40_s25 }
  0x11   :  { %s656_s26 = scalar_lea.vmem %s20_s23, 128  ;;  %p661_p6 = scmp.lt.s32.totalorder %s20_s23, %s20_s23 }
  0x12   :  { %p657_p5 = scmp.ne.s32.totalorder %s20_s23, %s656_s26  ;;  %p662_p7 = scmp.lt.s32.totalorder %s656_s26, %s656_s26 }
  0x14   :  { %p663_p8 = por %p662_p7, %p661_p6 }
  0x16   :  { %p664_p9 = pnand %p663_p8, %p657_p5 }
  0x18   :  { %667 = shalt.err (!%p664_p9)
}
  0x19   :  { %22 = dma.hbm_to_vmem [thread:$0]  %s826_s0, 128, %s20_s23, [#allocation3]  }
  0x1a   :  { %s676_s29 = scalar_lea.vmem %s41_s25, 1536  ;;  %p681_p11 = scmp.lt.s32.totalorder %s41_s25, %s41_s25 }
  0x1b   :  { %p677_p10 = scmp.ne.s32.totalorder %s41_s25, %s676_s29  ;;  %p682_p12 = scmp.lt.s32.totalorder %s676_s29, %s676_s29 }
  0x1d   :  { %p683_p13 = por %p682_p12, %p681_p11 }
  0x1f   :  { %p684_p0 = pnand %p683_p13, %p677_p10 }
  0x21   :  { %687 = shalt.err (!%p684_p0)
}
  0x22   :  { %46 = dma.hbm_to_vmem [thread:$0]  %s828_s2, 1536, %s41_s25, [#allocation6], %s737_s18, %s737_s18, %s738_s19  }
  0x23   :  { %s741_s5 = smov [#allocation8]  }
  0x24   :  { %s52_s6 = sshll.u32 %s741_s5, 4  ;;  %s53_s6 = int_to_ptr.vmem [resolvable:$true] %s52_s6 }
  0x25   :  { %s696_s7 = scalar_lea.vmem %s53_s6, 256  ;;  %p701_p2 = scmp.lt.s32.totalorder %s53_s6, %s53_s6 }
  0x26   :  { %p697_p1 = scmp.ne.s32.totalorder %s53_s6, %s696_s7  ;;  %p702_p3 = scmp.lt.s32.totalorder %s696_s7, %s696_s7 }
  0x28   :  { %p703_p4 = por %p702_p3, %p701_p2 }
  0x2a   :  { %p704_p5 = pnand %p703_p4, %p697_p1 }
  0x2c   :  { %707 = shalt.err (!%p704_p5)
}
  0x2d   :  { %58 = dma.hbm_to_vmem [thread:$0]  %s829_s3, 256, %s53_s6, [#allocation9], %s737_s18, %s737_s18, %s738_s19  }
  0x2e   :  { %728 = dma.done.wait [#allocation3], 128  }
  0x2f   :  { %729 = vsyncadd [#allocation3], 4294967168 }
  0x30   :  { %730 = dma.done.wait [#allocation6], 1920  }
  0x31   :  { %731 = vsyncadd [#allocation6], 4294965376 }
  0x32   :  { %732 = dma.done.wait [#allocation9], 256  }
  0x33   :  { %733 = vsyncadd [#allocation9], 4294967040  ;;  %v742_v0 = vmov 0.0   ;;  %vm743_vm0 = vmmov 0   ;;  %v74_v1 = vld [vmem:[#allocation5 + $0x10] sm:$0xff]  ;;  %v73_v2 = vld [vmem:[#allocation5 + $0x8] sm:$0xff] }
  0x34   :  { %557 = vmatprep.subr.mxu0 %v742_v0  ;;  %563 = vmatprep.mubr.msk.f32.mxu0 %vm743_vm0, %v742_v0  ;;  %v72_v3 = vld [vmem:[#allocation5] sm:$0xff]  ;;  %v71_v4 = vld [vmem:[#allocation2] sm:$0xff]  ;;  %vm80_vm1 = vcmask 195584   ;;  %vm156_vm2 = vcmask 261120   ;;  %v193_v15 = vld [vmem:[#allocation7 + $0x18] sm:$0xff]  ;;  %s744_s2 = smov [#allocation10]  }
  0x35   :  { %566 = vmatprep.subr.mxu1 %v742_v0  ;;  %574 = vmatprep.mubr.msk.f32.mxu1 %vm743_vm0, %v742_v0  ;;  %v524_v5 = vld [vmem:[#allocation8] ss:$0 sm:$0xff]  ;;  %v192_v16 = vld [vmem:[#allocation7 + $0x10] sm:$0xff]  ;;  %v191_v17 = vld [vmem:[#allocation7 + $0x8] sm:$0xff]  ;;  %s513_s3 = sshll.u32 %s744_s2, 4  ;;  %vm505_vm9 = vcmask 64512   ;;  %s514_s3 = int_to_ptr.vmem [resolvable:$true] %s513_s3 }
  0x36   :  { %558 = vmatpush3.msra.mxu0 %v74_v1  ;;  %567 = vmatpush3.msra.mxu1 %v193_v15  ;;  %v190_v18 = vld [vmem:[#allocation7] sm:$0xff]  ;;  %v309_v44 = vld [vmem:[#allocation7 + $0x38] sm:$0xff]  ;;  %v308_v45 = vld [vmem:[#allocation7 + $0x30] sm:$0xff]  ;;  %s708_s9 = scalar_lea.vmem %s514_s3, 128  ;;  %p713_p7 = scmp.lt.s32.totalorder %s514_s3, %s514_s3 }
  0x37   :  { %559 = vmatprep.subr.mxu0 %v742_v0  ;;  %568 = vmatprep.subr.mxu1 %v742_v0  ;;  %v526_v28 = vld [vmem:[#allocation8 + $0x1] ss:$0 sm:$0xff]  ;;  %v527_v30 = vld [vmem:[#allocation8 + $0x2] ss:$0 sm:$0xff]  ;;  %v528_v34 = vld [vmem:[#allocation8 + $0x3] ss:$0 sm:$0xff]  ;;  %p709_p6 = scmp.ne.s32.totalorder %s514_s3, %s708_s9  ;;  %p714_p8 = scmp.lt.s32.totalorder %s708_s9, %s708_s9 }
  0x38   :  { %560 = vmatpush3.msra.mxu0 %v73_v2  ;;  %569 = vmatpush3.msra.mxu1 %v192_v16  ;;  %v307_v46 = vld [vmem:[#allocation7 + $0x28] sm:$0xff]  ;;  %v306_v47 = vld [vmem:[#allocation7 + $0x20] sm:$0xff] }
  0x39   :  { %561 = vmatprep.subr.mxu0 %v742_v0  ;;  %570 = vmatprep.subr.mxu1 %v742_v0  ;;  %v530_v57 = vld [vmem:[#allocation8 + $0x4] ss:$0 sm:$0xff]  ;;  %v531_v59 = vld [vmem:[#allocation8 + $0x5] ss:$0 sm:$0xff]  ;;  %v532_v63 = vld [vmem:[#allocation8 + $0x6] ss:$0 sm:$0xff]  ;;  %p715_p9 = por %p714_p8, %p713_p7 }
  0x3a   :  { %562 = vmatpush3.msra.mxu0 %v72_v3  ;;  %571 = vmatpush3.msra.mxu1 %v191_v17 }
  0x3b   :  { %564 = vmatmul.mubr.msk.f32.vlgmr.msra.gmra.mxu0 %vm80_vm1, %v71_v4  ;;  %577 = vmatprep.subr.mxu0 %v742_v0  ;;  %p716_p10 = pnand %p715_p9, %p709_p6 }
  0x3c   :  { %585 = vmatprep.mubr.msk.f32.mxu0 %vm743_vm0, %v742_v0  ;;  %572 = vmatprep.subr.mxu1 %v742_v0 }
  0x3d   :  { %573 = vmatpush3.msra.mxu1 %v190_v18  ;;  %578 = vmatpush3.msra.mxu0 %v309_v44 }
  0x3e   :  { %588 = vmatprep.subr.mxu1 %v742_v0  ;;  %579 = vmatprep.subr.mxu0 %v742_v0 }
  0x3f   :  { %580 = vmatpush3.msra.mxu0 %v308_v45 }
  0x40   :  { %581 = vmatprep.subr.mxu0 %v742_v0 }
  0x41   :  { %582 = vmatpush3.msra.mxu0 %v307_v46 }
  0x42   :  { %583 = vmatprep.subr.mxu0 %v742_v0 }
  0x43   :  { %584 = vmatpush3.msra.mxu0 %v306_v47 }
  0xfb   :  { %v150_v6 = vpop.f32.mrf.mxu0 }
  0xfc   :  { %v151_v7 = vadd.f32 %v524_v5, %v150_v6 }
  0xfd   :  { %v565_v8 = vpop.f32.mrf.mxu0 }
  0xfe   :  { %v157_v9 = vsel %vm156_vm2, %v151_v7, 0.0 }
  0xff   :  { %158 = vadd.xlane.f32.xlu0 %v157_v9 }
 0x188   :  { %v159_v10 = vpop.xlane.xlu0 %158 }
 0x189   :  { %v161_v11 = vmul.f32 0.03125, %v159_v10  ;;  %v425_v10 = vld [vmem:[#allocation7 + $0x58] sm:$0xff] }
 0x18b   :  { %v162_v12 = vsub.f32 %v151_v7, %v161_v11  ;;  %v424_v11 = vld [vmem:[#allocation7 + $0x50] sm:$0xff] }
 0x18d   :  { %v163_v13 = vmul.f32 %v162_v12, %v162_v12 }
 0x18f   :  { %v164_v14 = vsel %vm156_vm2, %v163_v13, 0.0  ;;  %v422_v13 = vld [vmem:[#allocation7 + $0x40] sm:$0xff] }
 0x190   :  { %165 = vadd.xlane.f32.xlu0 %v164_v14 }
 0x219   :  { %v166_v19 = vpop.xlane.xlu0 %165 }
 0x21a   :  { %v168_v20 = vmul.f32 0.032258064, %v166_v19 }
 0x21c   :  { %608 = vrsqrt.f32 %v168_v20  ;;  %vm171_vm3 = vcmp.eq.f32.partialorder %v168_v20, inf  ;;  %v174_v23 = vand.u32 2147483648, %v168_v20  ;;  %vm173_vm4 = vcmp.eq.f32.partialorder %v168_v20, 0.0 }
 0x229   :  { %v609_v21 = vpop.eup %608 }
 0x22a   :  { %v170_v22 = vmul.f32 %v609_v21, %v168_v20 }
 0x22c   :  { %v172_v24 = vsel %vm171_vm3, %v168_v20, %v170_v22 }
 0x22d   :  { %v175_v25 = vsel %vm173_vm4, %v174_v23, %v172_v24  ;;  %v534_v23 = vld [vmem:[#allocation8 + $0x7] ss:$0 sm:$0xff] }
 0x22e   :  { %v176_v26 = vadd.f32 1e-06, %v175_v25  ;;  %v535_v25 = vld [vmem:[#allocation8 + $0x8] ss:$0 sm:$0xff] }
 0x230   :  { %610 = vrcp.f32 %v176_v26 }
 0x23d   :  { %v611_v27 = vpop.eup %610 }
 0x23e   :  { %v178_v29 = vmul.f32 %v611_v27, %v162_v12  ;;  %v423_v12 = vld [vmem:[#allocation7 + $0x48] sm:$0xff] }
 0x240   :  { %v183_v31 = vmul.f32 %v526_v28, %v178_v29  ;;  %v536_v28 = vld [vmem:[#allocation8 + $0x9] ss:$0 sm:$0xff] }
 0x242   :  { %v188_v32 = vadd.f32 %v527_v30, %v183_v31 }
 0x244   :  { %612 = vtanh.f32 %v188_v32 }
 0x251   :  { %v613_v33 = vpop.eup %612 }
 0x252   :  { %575 = vmatmul.mubr.msk.f32.vlgmr.msra.gmra.mxu1 %vm156_vm2, %v613_v33 }
 0x253   :  { %596 = vmatprep.mubr.msk.f32.mxu1 %vm743_vm0, %v742_v0  ;;  %589 = vmatpush3.msra.mxu1 %v425_v10 }
 0x254   :  { %590 = vmatprep.subr.mxu1 %v742_v0 }
 0x255   :  { %591 = vmatpush3.msra.mxu1 %v424_v11 }
 0x256   :  { %592 = vmatprep.subr.mxu1 %v742_v0 }
 0x257   :  { %593 = vmatpush3.msra.mxu1 %v423_v12 }
 0x258   :  { %594 = vmatprep.subr.mxu1 %v742_v0 }
 0x259   :  { %595 = vmatpush3.msra.mxu1 %v422_v13 }
 0x312   :  { %v268_v35 = vpop.f32.mrf.mxu1 }
 0x313   :  { %v269_v36 = vadd.f32 %v528_v34, %v268_v35 }
 0x314   :  { %v576_v37 = vpop.f32.mrf.mxu1 }
 0x315   :  { %v274_v38 = vsel %vm156_vm2, %v269_v36, 0.0 }
 0x316   :  { %275 = vadd.xlane.f32.xlu1 %v274_v38 }
 0x39f   :  { %v276_v39 = vpop.xlane.xlu1 %275 }
 0x3a0   :  { %v277_v40 = vmul.f32 0.03125, %v276_v39 }
 0x3a2   :  { %v278_v41 = vsub.f32 %v269_v36, %v277_v40 }
 0x3a4   :  { %v279_v42 = vmul.f32 %v278_v41, %v278_v41 }
 0x3a6   :  { %v280_v43 = vsel %vm156_vm2, %v279_v42, 0.0 }
 0x3a7   :  { %281 = vadd.xlane.f32.xlu1 %v280_v43 }
 0x430   :  { %v282_v48 = vpop.xlane.xlu1 %281 }
 0x431   :  { %v283_v49 = vmul.f32 0.032258064, %v282_v48 }
 0x433   :  { %614 = vrsqrt.f32 %v283_v49  ;;  %vm286_vm5 = vcmp.eq.f32.partialorder %v283_v49, inf  ;;  %v289_v52 = vand.u32 2147483648, %v283_v49  ;;  %vm288_vm6 = vcmp.eq.f32.partialorder %v283_v49, 0.0 }
 0x440   :  { %v615_v50 = vpop.eup %614 }
 0x441   :  { %v285_v51 = vmul.f32 %v615_v50, %v283_v49 }
 0x443   :  { %v287_v53 = vsel %vm286_vm5, %v283_v49, %v285_v51 }
 0x444   :  { %v290_v54 = vsel %vm288_vm6, %v289_v52, %v287_v53 }
 0x445   :  { %v291_v55 = vadd.f32 1e-06, %v290_v54 }
 0x447   :  { %616 = vrcp.f32 %v291_v55 }
 0x454   :  { %v617_v56 = vpop.eup %616 }
 0x455   :  { %v293_v58 = vmul.f32 %v617_v56, %v278_v41 }
 0x457   :  { %v298_v60 = vmul.f32 %v530_v57, %v293_v58 }
 0x459   :  { %v303_v61 = vadd.f32 %v531_v59, %v298_v60 }
 0x45b   :  { %618 = vtanh.f32 %v303_v61 }
 0x468   :  { %v619_v62 = vpop.eup %618 }
 0x469   :  { %586 = vmatmul.mubr.msk.f32.vlgmr.msra.gmra.mxu0 %vm156_vm2, %v619_v62 }
 0x529   :  { %v384_v1 = vpop.f32.mrf.mxu0 }
 0x52a   :  { %v385_v2 = vadd.f32 %v532_v63, %v384_v1 }
 0x52b   :  { %v587_v3 = vpop.f32.mrf.mxu0 }
 0x52c   :  { %v390_v4 = vsel %vm156_vm2, %v385_v2, 0.0 }
 0x52d   :  { %391 = vadd.xlane.f32.xlu0 %v390_v4 }
 0x5b6   :  { %v392_v5 = vpop.xlane.xlu0 %391 }
 0x5b7   :  { %v393_v6 = vmul.f32 0.03125, %v392_v5 }
 0x5b9   :  { %v394_v7 = vsub.f32 %v385_v2, %v393_v6 }
 0x5bb   :  { %v395_v8 = vmul.f32 %v394_v7, %v394_v7 }
 0x5bd   :  { %v396_v9 = vsel %vm156_vm2, %v395_v8, 0.0 }
 0x5be   :  { %397 = vadd.xlane.f32.xlu1 %v396_v9 }
 0x647   :  { %v398_v14 = vpop.xlane.xlu1 %397 }
 0x648   :  { %v399_v15 = vmul.f32 0.032258064, %v398_v14 }
 0x64a   :  { %620 = vrsqrt.f32 %v399_v15  ;;  %vm402_vm7 = vcmp.eq.f32.partialorder %v399_v15, inf  ;;  %v405_v18 = vand.u32 2147483648, %v399_v15  ;;  %vm404_vm8 = vcmp.eq.f32.partialorder %v399_v15, 0.0 }
 0x657   :  { %v621_v16 = vpop.eup %620 }
 0x658   :  { %v401_v17 = vmul.f32 %v621_v16, %v399_v15 }
 0x65a   :  { %v403_v19 = vsel %vm402_vm7, %v399_v15, %v401_v17 }
 0x65b   :  { %v406_v20 = vsel %vm404_vm8, %v405_v18, %v403_v19 }
 0x65c   :  { %v407_v21 = vadd.f32 1e-06, %v406_v20 }
 0x65e   :  { %622 = vrcp.f32 %v407_v21 }
 0x66b   :  { %v623_v22 = vpop.eup %622 }
 0x66c   :  { %v409_v24 = vmul.f32 %v623_v22, %v394_v7 }
 0x66e   :  { %v414_v26 = vmul.f32 %v534_v23, %v409_v24 }
 0x670   :  { %v419_v27 = vadd.f32 %v535_v25, %v414_v26 }
 0x672   :  { %624 = vtanh.f32 %v419_v27 }
 0x67f   :  { %v625_v0 = vpop.eup %624 }
 0x680   :  { %597 = vmatmul.mubr.msk.f32.vlgmr.msra.gmra.mxu1 %vm156_vm2, %v625_v0 }
 0x740   :  { %v500_v29 = vpop.f32.mrf.mxu1 }
 0x741   :  { %v501_v30 = vadd.f32 %v536_v28, %v500_v29 }
 0x742   :  { %v598_v31 = vpop.f32.mrf.mxu1 }
 0x743   :  { %626 = vtanh.f32 %v501_v30 }
 0x750   :  { %v627_v32 = vpop.eup %626 }
 0x751   :  { %506 = vst.msk [vmem:[#allocation10] sm:$0xff] %vm505_vm9, %v627_v32 }
 0x752   :  { %719 = shalt.err (!%p716_p10)
}
 0x753   :  { %516 = dma.vmem_to_hbm [thread:$0]  %s514_s3, 128, %s830_s4, [#allocation4]  }
 0x754   :  { %734 = dma.done.wait [#allocation4], 128  }
 0x755   :  { %735 = vsyncadd [#allocation4], 4294967168 }
 0x756   :  { %520 = vsyncpa [#allocation3], 1 }
 0x757   :  { %521 = vsyncpa [#allocation6], 1 }
 0x758   :  { %522 = vsyncpa [#allocation9], 1 }
 0x759   :  { %523 = vsyncpa [#allocation4], 1 }

</bundles_post_ra>
